<compile_context>
chip_gen: v7x
topology: tpu7x:2x2x1
jax: 0.10.0
libtpu: 0.0.40
codegen_flags: <defaults>
</compile_context>

<pallas_src>
import jax
import jax.numpy as jnp
from jax.experimental import pallas as pl
from jax.experimental.pallas import tpu as pltpu


def _round_up(x, m):
    return (x + m - 1) // m * m


def _unpool_kernel(lo_ref, hi_ref, cat_ref, idx_ref, out_ref, acc_ref):
    # lo_ref, hi_ref: SMEM [B, num_hw_tiles] -- active N-tile range per (b, p)
    # cat_ref: VMEM [1, C, N_TILE]   per-superpixel features (one N tile)
    # idx_ref: VMEM [1, 1, T_HW]     int32 segment id per pixel (one HW tile)
    # out_ref: VMEM [1, C, T_HW]     unpooled features for this HW tile
    # acc_ref: VMEM [C, T_HW] f32    accumulator across N tiles
    b = pl.program_id(0)
    p = pl.program_id(1)
    k = pl.program_id(2)
    nk = pl.num_programs(2)

    @pl.when(k == 0)
    def _init():
        acc_ref[...] = jnp.zeros_like(acc_ref)

    lo = lo_ref[b, p]
    hi = hi_ref[b, p]

    # Only N tiles that intersect this HW tile's segment-id range do any work
    # (superpixel locality => usually a narrow band of active N tiles).
    @pl.when(jnp.logical_and(k >= lo, k <= hi))
    def _compute():
        cat = cat_ref[0]                      # [C, N_TILE]
        idx = idx_ref[0]                      # [1, T_HW] int32
        n_tile = cat.shape[1]
        # Column iota (N_TILE, 1): avoids materializing an [N_TILE, T_HW] iota.
        seg = jax.lax.broadcasted_iota(jnp.int32, (n_tile, 1), 0) + k * n_tile
        # One compare + one cast.  Out-of-range / padded segment ids match
        # nothing and therefore produce zeros (same semantics as before).
        onehot = (idx == seg).astype(cat.dtype)            # [N_TILE, T_HW]
        acc_ref[...] += jnp.dot(cat, onehot,
                                preferred_element_type=jnp.float32)

    @pl.when(k == nk - 1)
    def _finalize():
        out_ref[0] = acc_ref[...].astype(out_ref.dtype)


def unpool_features(cat_encoded_wg, shape_input_features_in, label_mask,
                    *, hw_tile=None, n_tile=None):
    """Pallas equivalent of UnpoolFeatures.forward.

    cat_encoded_wg: [B, C, N_max] float
    shape_input_features_in: (B, C, H, W)
    label_mask: [B, 1, H, W] integer segment ids in [0, N_max)
    returns: [B, C, H, W]
    """
    batch_size, n_channels, H, W = shape_input_features_in
    B, C, N = cat_encoded_wg.shape
    assert B == batch_size and C == n_channels
    HW = H * W

    # ---- tile sizes: lane-dense output, modest VMEM footprint on all gens ----
    if hw_tile is None:
        hw_tile = min(_round_up(HW, 128), 2048)   # pixel tile (>=128 lanes)
    if n_tile is None:
        n_tile = min(_round_up(N, 128), 256)      # segment (MXU K) tile
    HW_pad = _round_up(HW, hw_tile)
    N_pad = _round_up(N, n_tile)
    num_p = HW_pad // hw_tile
    num_k = N_pad // n_tile

    # ---- glue (plain JAX): flatten / pad indices and features ----
    idx = label_mask.reshape(B, HW).astype(jnp.int32)
    if HW_pad != HW:
        # Pad with segment id 0 (valid id); padded pixels are sliced away below.
        idx = jnp.pad(idx, ((0, 0), (0, HW_pad - HW)))
    cat = cat_encoded_wg
    if N_pad != N:
        cat = jnp.pad(cat, ((0, 0), (0, 0), (0, N_pad - N)))

    # Per-(b, hw_tile) active N-tile range, scalar-prefetched into SMEM.
    idx_tiles = idx.reshape(B, num_p, hw_tile)
    lo_tile = (jnp.min(idx_tiles, axis=-1) // n_tile).astype(jnp.int32)
    hi_tile = (jnp.max(idx_tiles, axis=-1) // n_tile).astype(jnp.int32)

    idx3 = idx.reshape(B, 1, HW_pad)

    def _cat_map(b, p, k, lo_ref, hi_ref):
        # Clamp the N-tile index into this HW tile's active range so skipped
        # iterations reuse the already-resident block (no extra DMA).
        kk = jnp.minimum(jnp.maximum(k, lo_ref[b, p]), hi_ref[b, p])
        return (b, 0, kk)

    out_flat = pl.pallas_call(
        _unpool_kernel,
        out_shape=jax.ShapeDtypeStruct((B, C, HW_pad), cat_encoded_wg.dtype),
        grid_spec=pltpu.PrefetchScalarGridSpec(
            num_scalar_prefetch=2,
            grid=(B, num_p, num_k),
            in_specs=[
                pl.BlockSpec((1, C, n_tile), _cat_map),
                pl.BlockSpec((1, 1, hw_tile),
                             lambda b, p, k, lo_ref, hi_ref: (b, 0, p)),
            ],
            out_specs=pl.BlockSpec((1, C, hw_tile),
                                   lambda b, p, k, lo_ref, hi_ref: (b, 0, p)),
            scratch_shapes=[pltpu.VMEM((C, hw_tile), jnp.float32)],
        ),
        compiler_params=pltpu.CompilerParams(
            dimension_semantics=("parallel", "parallel", "arbitrary")),
    )(lo_tile, hi_tile, cat, idx3)

    return out_flat[:, :, :HW].reshape(batch_size, n_channels, H, W)


if __name__ == "__main__":
    key = jax.random.PRNGKey(0)
    k1, k2 = jax.random.split(key)

    # Small shapes chosen to exercise HW tiling (2 pixel tiles, last partial),
    # N tiling (2 segment tiles, last partial) and the active-range skip path.
    B, C, H, W = 2, 4, 16, 12   # HW = 192 -> 2 tiles of 128 (padded to 256)
    N_MAX = 200                 # -> 2 N tiles of 128 (padded to 256)

    cat_encoded_wg = jax.random.normal(k1, (B, C, N_MAX), dtype=jnp.float32)
    label_mask = jax.random.randint(k2, (B, 1, H, W), 0, N_MAX, dtype=jnp.int32)

    out = unpool_features(cat_encoded_wg, (B, C, H, W), label_mask,
                          hw_tile=128, n_tile=128)
    out = jax.block_until_ready(out)

    # Pure-JAX reference (matches torch.gather along dim 2 + reshape).
    idx = jnp.broadcast_to(label_mask, (B, C, H, W)).reshape(B, C, H * W)
    ref = jnp.take_along_axis(cat_encoded_wg, idx, axis=2).reshape(B, C, H, W)

    assert out.shape == (B, C, H, W)
    assert out.dtype == cat_encoded_wg.dtype
    assert jnp.allclose(out, ref, atol=1e-5, rtol=1e-5)

    print("KERNEL_OK")
</pallas_src>

<mosaic_0001>
module attributes {stable_mosaic.version = 11 : i64} {
  func.func @_unpool_kernel(%arg0: i32, %arg1: i32, %arg2: i32, %arg3: memref<2x2xi32, #tpu.memory_space<smem>>, %arg4: memref<2x2xi32, #tpu.memory_space<smem>>, %arg5: memref<1x4x128xf32, #tpu.memory_space<vmem>>, %arg6: memref<1x1x128xi32, #tpu.memory_space<vmem>>, %arg7: memref<1x4x128xf32, #tpu.memory_space<vmem>>, %arg8: memref<4x128xf32, #tpu.memory_space<vmem>>) attributes {dimension_semantics = [#tpu.dimension_semantics<parallel>, #tpu.dimension_semantics<parallel>, #tpu.dimension_semantics<arbitrary>], iteration_bounds = array<i64: 2, 2, 2>, scalar_prefetch = 2 : i64, scratch_operands = 1 : i64, tpu.core_type = #tpu.core_type<tc>, window_params = [{transform_indices = @transform_0, window_bounds = array<i64: 1, 4, 128>}, {transform_indices = @transform_1, window_bounds = array<i64: 1, 1, 128>}, {transform_indices = @transform_2, window_bounds = array<i64: 1, 4, 128>}]} {
    %c0_i32 = arith.constant 0 : i32
    %0 = arith.cmpi eq, %arg2, %c0_i32 : i32
    %1 = arith.extui %0 : i1 to i32
    %c0_i32_0 = arith.constant 0 : i32
    %2 = arith.cmpi ne, %1, %c0_i32_0 : i32
    scf.if %2 {
      %cst = arith.constant 0.000000e+00 : f32
      %17 = vector.broadcast %cst : f32 to vector<4x128xf32>
      %c0 = arith.constant 0 : index
      %c0_3 = arith.constant 0 : index
      %18 = vector.load %arg8[%c0, %c0_3] : memref<4x128xf32, #tpu.memory_space<vmem>>, vector<4x128xf32>
      tpu.vector_store %arg8[%c0, %c0_3], %17 {strides = array<i32>} : memref<4x128xf32, #tpu.memory_space<vmem>>, vector<4x128xf32>,
    } else {
    }
    %3 = arith.index_cast %arg0 : i32 to index
    %4 = arith.index_cast %arg1 : i32 to index
    %5 = memref.load %arg3[%3, %4] : memref<2x2xi32, #tpu.memory_space<smem>>
    %6 = arith.index_cast %arg0 : i32 to index
    %7 = arith.index_cast %arg1 : i32 to index
    %8 = memref.load %arg4[%6, %7] : memref<2x2xi32, #tpu.memory_space<smem>>
    %9 = arith.cmpi sge, %arg2, %5 : i32
    %10 = arith.cmpi sle, %arg2, %8 : i32
    %11 = arith.andi %9, %10 : i1
    %12 = arith.extui %11 : i1 to i32
    %c0_i32_1 = arith.constant 0 : i32
    %13 = arith.cmpi ne, %12, %c0_i32_1 : i32
    scf.if %13 {
      %c0 = arith.constant 0 : index
      %c0_3 = arith.constant 0 : index
      %c0_4 = arith.constant 0 : index
      %17 = vector.load %arg5[%c0, %c0_3, %c0_4] : memref<1x4x128xf32, #tpu.memory_space<vmem>>, vector<1x4x128xf32>
      %18 = vector.shape_cast %17 : vector<1x4x128xf32> to vector<4x128xf32>
      %c0_5 = arith.constant 0 : index
      %c0_6 = arith.constant 0 : index
      %c0_7 = arith.constant 0 : index
      %19 = vector.load %arg6[%c0_5, %c0_6, %c0_7] : memref<1x1x128xi32, #tpu.memory_space<vmem>>, vector<1x1x128xi32>
      %20 = vector.shape_cast %19 : vector<1x1x128xi32> to vector<1x128xi32>
      %21 = tpu.iota {dimensions = array<i32: 0>} : vector<128x1xi32>
      %c128_i32 = arith.constant 128 : i32
      %22 = arith.muli %arg2, %c128_i32 : i32
      %23 = vector.broadcast %22 : i32 to vector<128x1xi32>
      %24 = arith.addi %21, %23 : vector<128x1xi32>
      %25 = vector.broadcast %20 : vector<1x128xi32> to vector<128x128xi32>
      %26 = vector.broadcast %24 : vector<128x1xi32> to vector<128x128xi32>
      %27 = arith.cmpi eq, %25, %26 : vector<128x128xi32>
      %28 = arith.extui %27 : vector<128x128xi1> to vector<128x128xi32>
      %29 = arith.sitofp %28 : vector<128x128xi32> to vector<128x128xf32>
      %c0_8 = arith.constant 0 : index
      %c0_9 = arith.constant 0 : index
      %30 = vector.load %arg8[%c0_8, %c0_9] : memref<4x128xf32, #tpu.memory_space<vmem>>, vector<4x128xf32>
      %cst = arith.constant dense<0.000000e+00> : vector<4x128xf32>
      %31 = tpu.matmul %18, %29, %cst {dimension_numbers = #tpu.dot_dimension_numbers<[1], [0], [0], [1], [0, 0, 1, 1], [], []>} : vector<4x128xf32>, vector<128x128xf32>, vector<4x128xf32> -> vector<4x128xf32>
      %32 = arith.addf %30, %31 : vector<4x128xf32>
      %c0_10 = arith.constant 0 : index
      %c0_11 = arith.constant 0 : index
      %33 = vector.load %arg8[%c0_10, %c0_11] : memref<4x128xf32, #tpu.memory_space<vmem>>, vector<4x128xf32>
      tpu.vector_store %arg8[%c0_10, %c0_11], %32 {strides = array<i32>} : memref<4x128xf32, #tpu.memory_space<vmem>>, vector<4x128xf32>,
    } else {
    }
    %c1_i32 = arith.constant 1 : i32
    %14 = arith.cmpi eq, %arg2, %c1_i32 : i32
    %15 = arith.extui %14 : i1 to i32
    %c0_i32_2 = arith.constant 0 : i32
    %16 = arith.cmpi ne, %15, %c0_i32_2 : i32
    scf.if %16 {
      %c0 = arith.constant 0 : index
      %c0_3 = arith.constant 0 : index
      %17 = vector.load %arg8[%c0, %c0_3] : memref<4x128xf32, #tpu.memory_space<vmem>>, vector<4x128xf32>
      %c0_4 = arith.constant 0 : index
      %c0_5 = arith.constant 0 : index
      %c0_6 = arith.constant 0 : index
      %18 = vector.load %arg7[%c0_4, %c0_5, %c0_6] : memref<1x4x128xf32, #tpu.memory_space<vmem>>, vector<1x4x128xf32>
      %19 = vector.shape_cast %18 : vector<1x4x128xf32> to vector<4x128xf32>
      %20 = vector.shape_cast %17 : vector<4x128xf32> to vector<1x4x128xf32>
      tpu.vector_store %arg7[%c0_4, %c0_5, %c0_6], %20 {strides = array<i32>} : memref<1x4x128xf32, #tpu.memory_space<vmem>>, vector<1x4x128xf32>,
    } else {
    }
    return
  }
  func.func @transform_0(%arg0: i32, %arg1: i32, %arg2: i32, %arg3: memref<2x2xi32, #tpu.memory_space<smem>>, %arg4: memref<2x2xi32, #tpu.memory_space<smem>>) -> (i32, i32, i32) {
    %0 = arith.index_cast %arg0 : i32 to index
    %1 = arith.index_cast %arg1 : i32 to index
    %2 = memref.load %arg3[%0, %1] : memref<2x2xi32, #tpu.memory_space<smem>>
    %3 = arith.maxsi %arg2, %2 : i32
    %4 = arith.index_cast %arg0 : i32 to index
    %5 = arith.index_cast %arg1 : i32 to index
    %6 = memref.load %arg4[%4, %5] : memref<2x2xi32, #tpu.memory_space<smem>>
    %7 = arith.minsi %3, %6 : i32
    %c0_i32 = arith.constant 0 : i32
    %c0_i32_0 = arith.constant 0 : i32
    return %arg0, %c0_i32, %7 : i32, i32, i32
  }
  func.func @transform_1(%arg0: i32, %arg1: i32, %arg2: i32, %arg3: memref<2x2xi32, #tpu.memory_space<smem>>, %arg4: memref<2x2xi32, #tpu.memory_space<smem>>) -> (i32, i32, i32) {
    %c0_i32 = arith.constant 0 : i32
    %c0_i32_0 = arith.constant 0 : i32
    return %arg0, %c0_i32, %arg1 : i32, i32, i32
  }
  func.func @transform_2(%arg0: i32, %arg1: i32, %arg2: i32, %arg3: memref<2x2xi32, #tpu.memory_space<smem>>, %arg4: memref<2x2xi32, #tpu.memory_space<smem>>) -> (i32, i32, i32) {
    %c0_i32 = arith.constant 0 : i32
    %c0_i32_0 = arith.constant 0 : i32
    return %arg0, %c0_i32, %arg1 : i32, i32, i32
  }
}

</mosaic_0001>

<bundles_post_ra>
// kernel: tpu_custom_call.1
= control target key start
LH: loop header
LB: loop body
LE: loop exit
PB: predicated region body
PF: predicated region fallthrough
CT: control target
= control target key end

     0   :  { %s1447_s0 = inlined_call_operand.hbm [shape: s32[2,2], index: 0, kind: input, shape index: {}]   ;;  %s1448_s2 = inlined_call_operand.hbm [shape: f32[2,4,256], index: 2, kind: input, shape index: {}]   ;;  %s1449_s3 = inlined_call_operand.vmem [shape: s32[2,1,256], index: 3, kind: input, shape index: {}]   ;;  %s1450_s4 = inlined_call_operand.hbm [shape: f32[2,4,256], index: 4, kind: output, shape index: {}]   ;;  %s1451_s1 = inlined_call_operand.vmem [shape: s32[2,2], index: 1, kind: input, shape index: {}]  }
   0x1   :  { %s849_s17 = scalar_lea.hbm %s1447_s0, 32 }
   0x2   :  { %p850_p0 = scmp.ne.s32.totalorder %s1447_s0, %s849_s17  ;;  %p853_p1 = scmp.lt.u32.totalorder %s849_s17, %s1447_s0 }
   0x4   :  { %p855_p2 = pnand %p853_p1, %p850_p0 }
   0x6   :  { %858 = shalt.err (!%p855_p2)  }
   0x7   :  { %s1043_s22 = smov [#allocation4]   ;;  %s11_s27 = sshll.u32 %s1451_s1, 4  ;;  %s12_s27 = int_to_ptr.vmem [resolvable:$true] %s11_s27 }
   0x8   :  { %10 = dma.hbm_to_smem %s1447_s0, 32, %s1043_s22, [#allocation3] }
   0x9   :  { %s859_s28 = scalar_lea.vmem %s12_s27, 32  ;;  %p864_p4 = scmp.lt.s32.totalorder %s12_s27, %s12_s27 }
   0xa   :  { %p860_p3 = scmp.ne.s32.totalorder %s12_s27, %s859_s28  ;;  %p865_p5 = scmp.lt.s32.totalorder %s859_s28, %s859_s28 }
   0xc   :  { %p866_p6 = por %p865_p5, %p864_p4 }
   0xe   :  { %p867_p7 = pnand %p866_p6, %p860_p3 }
  0x10   :  { %870 = shalt.err (!%p867_p7)  }
  0x11   :  { %s1044_s29 = smov [#allocation5]  }
  0x12   :  { %14 = dma.vmem_to_smem %s12_s27, 32, %s1044_s29, [#allocation3] }
  0x13   :  { %981 = dma.done.wait [#allocation3], 64 }
  0x14   :  { %982 = vsyncadd [#allocation3], 4294967232 }
  0x15   :  { %16 = sfence }
  0x16   :  { %17 = vsyncpa [#allocation7], 0 }
  0x17   :  { %19 = vsyncpa [#allocation7 + $0x1], 0 }
  0x18   :  { %20 = vsyncpa [#allocation8], 0 }
  0x19   :  { %22 = vsyncpa [#allocation8 + $0x1], 0  ;;  %s1092_s0 = smov 0   ;;  %s1094_s1 = smov 0  }
  0x1a   :  { %s1096_s30 = smov 0   ;;  %s1098_s5 = smov 0  }
  0x1b   :  { %s1100_s6 = smov 0   ;;  %s1102_s7 = smov 0  }
  0x1c   :  { %s1104_s8 = smov 0   ;;  %s1106_s9 = smov 0  }
  0x1d   :  { %s1108_s10 = smov 0   ;;  %s1110_s11 = smov 0  }
  0x1e   :  { %s1112_s12 = smov 0   ;;  %s1114_s13 = smov 0  }
  0x1f   :  { %s1116_s14 = smov 0  }
  0x20 LB: > { %1460 = sst [smem:[#allocation17_spill]] %s1001_s30  ;;  %s584_s15 = sadd.s32 4294967295, %s1041_s14   ;;  %s1041_s14 = sphi %s1116_s14, %s28_s14   ;;  %s1037_s13 = sphi %s1114_s13, %s1494_s13   ;;  %s1033_s12 = sphi %s1112_s12, %s1485_s12   ;;  %s1029_s11 = sphi %s1110_s11, %s1493_s11   ;;  %s1025_s10 = sphi %s1108_s10, %s1492_s10   ;;  %s1021_s9 = sphi %s1106_s9, %s1483_s9   ;;  %s1017_s8 = sphi %s1104_s8, %s1491_s8   ;;  %s1013_s7 = sphi %s1102_s7, %s1482_s7   ;;  %s1009_s6 = sphi %s1100_s6, %s1490_s6   ;;  %s1005_s5 = sphi %s1098_s5, %s1489_s5   ;;  %s1001_s30 = sphi %s1096_s30, %s1480_s30   ;;  %s997_s1 = sphi %s1094_s1, %s1488_s1   ;;  %s993_s0 = sphi %s1092_s0, %s1487_s0  }
  0x21   : > { %1461 = sst [smem:[#allocation18_spill]] %s1013_s7  ;;  %s40_s16 = sadd.s32 1, %s1029_s11 }
  0x22   : > { %1462 = sst [smem:[#allocation19_spill]] %s1033_s12  ;;  %p41_p8 = scmp.ge.s32.totalorder %s40_s16, 2 }
  0x23   : > { %s43_s17 = sadd.s32 1, %s1033_s12  ;;  %s51_s18 = sshra.s32 %s1033_s12, 7 }
  0x24   : > { %s56_s19 = sand.u32 127, %s1033_s12  ;;  %s1496_s16 = smov (%p41_p8, %s40_s16), 0 }
  0x25   : > { %1463 = sst [smem:[#allocation20_spill]] %s1496_s16  ;;  %s1498_s17 = smov (!%p41_p8, %s43_s17), %s1033_s12 }
  0x26   : > { %s47_s20 = sadd.s32 1, %s1037_s13  ;;  %s53_s21 = sadd.s32 %s1037_s13, %s51_s18 }
  0x27   : > { %p45_p9 = scmp.ge.s32.totalorder %s1498_s17, 2  ;;  %s586_s22 = sshll.u32 %s53_s21, 7 }
  0x28   : > { %s1168_s24 = sadd.s32 %s586_s22, %s56_s19  ;;  %p89_p10 = scmp.ne.s32.totalorder %s1013_s7, %s1009_s6 }
  0x29   : > { %s1500_s17 = smov (%p45_p9, %s1498_s17), 0  ;;  %s1502_s20 = smov (!%p45_p9, %s47_s20), %s1037_s13 }
  0x2a   : > { %1464 = sst [smem:[#allocation21_spill]] %s1500_s17  ;;  %p49_p11 = scmp.ge.s32.totalorder %s1502_s20, 2 }
  0x2b   : > { %s58_s25 = sld [smem:[#allocation4 + %s1168_s24]]  ;;  %s64_s27 = sshra.s32 %s1500_s17, 7 }
  0x2c   : > { %s61_s26 = sld [smem:[#allocation5 + %s1168_s24]]  ;;  %s69_s28 = sand.u32 127, %s1500_s17 }
  0x2d   : > { %s1504_s20 = smov (%p49_p11, %s1502_s20), 0  ;;  %p90_p12 = scmp.eq.s32.totalorder %s1041_s14, 0 }
  0x2e   : > { %1465 = sst [smem:[#allocation22_spill]] %s1504_s20  ;;  %p95_p13 = scmp.ne.s32.totalorder %s1009_s6, %s1005_s5 }
  0x2f   : > { %s66_s29 = sadd.s32 %s64_s27, %s1504_s20  ;;  %s1187_s18 = ssub.s32 %s1037_s13, %s1504_s20 }
  0x30   : > { %s587_s19 = sshll.u32 %s66_s29, 7  ;;  %p96_p1 = scmp.eq.s32.totalorder %s584_s15, 0 }
  0x31   : > { %p59_p0 = scmp.gt.s32.totalorder %s1029_s11, %s58_s25  ;;  %s70_s21 = sadd.s32 %s587_s19, %s69_s28 }
  0x32   : > { %s71_s23 = sld [smem:[#allocation4 + %s70_s21]]  ;;  %p1193_p3 = por %p96_p1, %p95_p13 }
  0x33   : > { %s60_s22 = scalar_select %p59_p0, %s1029_s11, %s58_s25 }
  0x34   : > { %s74_s5 = sld [smem:[#allocation5 + %s70_s21]]  ;;  %s134_s20 = ssub.s32 %s1033_s12, %s1500_s17 }
  0x35   : > { %p62_p2 = scmp.lt.s32.totalorder %s60_s22, %s61_s26  ;;  %s138_s29 = sadd.s32 1, %s1001_s30 }
  0x36   : > { %s1466_s27 = scalar_select %p1193_p3, 1, 0 }
  0x37   : > { %s1506_s22 = smov (!%p62_p2, %s60_s22), %s61_s26  ;;  %s135_s28 = sor.u32 %s134_s20, %s1187_s18 }
  0x38   : > { %p148_p4 = scmp.ne.s32.totalorder %s1001_s30, %s997_s1  ;;  %p136_p5 = scmp.eq.s32.totalorder %s135_s28, 0 }
  0x39   : > { %p149_p6 = scmp.eq.s32.totalorder %s584_s15, 7  ;;  %p72_p7 = scmp.gt.s32.totalorder %s1496_s16, %s71_s23 }
  0x3a   : > { %p154_p8 = scmp.ne.s32.totalorder %s997_s1, %s993_s0  ;;  %s1469_s26 = sadd.s32 4294967294, %s1041_s14  }
  0x3b   : > { %s1209_s25 = scalar_select %p136_p5, %s1001_s30, %s138_s29  }
  0x3c   : > { %s73_s19 = scalar_select %p72_p7, %s1496_s16, %s71_s23 }
  0x3d   : > { %1467 = sst [smem:[#allocation23_spill]] %s1209_s25  ;;  %p1212_p9 = por %p149_p6, %p148_p4 }
  0x3e   : > { %p155_p11 = scmp.eq.s32.totalorder %s1469_s26, 7  ;;  %p75_p13 = scmp.lt.s32.totalorder %s73_s19, %s74_s5 }
  0x3f   : > { %s1468_s21 = scalar_select %p1212_p9, 1, 0 }
  0x40   : > { %p1218_p0 = por %p155_p11, %p154_p8  ;;  %s1508_s19 = smov (!%p75_p13, %s73_s19), %s74_s5 }
  0x41   : > { %p1227_p1 = por %p90_p12, %p89_p10  ;;  %s78_s23 = ssub.s32 %s1506_s22, %s1508_s19 }
  0x42   : > { %s1470_s20 = scalar_select %p1218_p0, 1, 0 }
  0x43   : > { %s82_s29 = sadd.s32 1, %s1013_s7  ;;  %s79_s28 = sor.u32 %s78_s23, %s1187_s18 }
  0x44   : > { %p736_p2 = scmp.lt.s32.totalorder %s1041_s14, 8  ;;  %p80_p4 = scmp.eq.s32.totalorder %s79_s28, 0 }
  0x45   : > { %s175_s26 = sand.u32 1, %s1013_s7   ;;  %s1510_s24 = smov (!%p1227_p1, %s1168_s24), 0 }
  0x46   : > { %s716_s5 = scalar_select %p1227_p1, [#allocation4], [#allocation10] }
  0x47   : > { %s1238_s17 = scalar_select %p80_p4, %s1013_s7, %s82_s29  }
  0x48   : > { %s1512_s5 = smov (!%p736_p2, %s716_s5), [#allocation12]  ;;  %s1514_s24 = smov (!%p736_p2, %s1510_s24), 0 }
  0x49   : > { %1472 = sst [smem:[#allocation24_spill]] %s1238_s17  ;;  %s590_s18 = sshll.u32 %s175_s26, 2 }
  0x4a   : > { %s718_s22 = scalar_select %p1227_p1, [#allocation5], [#allocation11] }
  0x4b   : > { %s187_s19 = sld [smem:[%s1512_s5 + %s1514_s24]]  ;;  %p1247_p10 = pnand %p736_p2, %p1227_p1 }
  0x4c   : > { %s1516_s22 = smov (!%p736_p2, %s718_s22), [#allocation13]  ;;  %p594_p12 = scmp.ge.s32.totalorder %s1041_s14, 1 }
  0x4d   : > { %s190_s28 = sld [smem:[%s1516_s22 + %s1514_s24]]  ;;  %p216_p5 = scmp.lt.s32.totalorder %s1041_s14, 9 }
  0x4e   : > { %s592_s5 = sshll.u32 %s1037_s13, 1  ;;  %s179_s12 = scalar_lea.vmem [#allocation6], %s590_s18 }
  0x4f   : > { %p1254_p7 = pnand %p594_p12, %p216_p5  ;;  %s201_s17 = sshll.u32 %s179_s12, 4  ;;  %s1260_s17 = int_to_ptr.vmem [resolvable:$true] %s201_s17 }
  0x50   : > { %s176_s30 = scalar_lea.sflag [#allocation7], %s175_s26  ;;  %p873_p13 = pneg %p1247_p10 }
  0x51   : > { %p188_p6 = scmp.gt.s32.totalorder %s1029_s11, %s187_s19  ;;  %s876_s18 = scalar_lea.hbm %s1448_s2, 256 }
  0x53   : > { %s189_s16 = scalar_select %p188_p6, %s1029_s11, %s187_s19 }
  0x55   : > { %p191_p8 = scmp.lt.s32.totalorder %s189_s16, %s190_s28 }
  0x57   : > { %s1518_s16 = smov (!%p191_p8, %s189_s16), %s190_s28 }
  0x58   : > { %s197_s15 = sadd.s32 %s592_s5, %s1518_s16 }
  0x59   : > { %s593_s7 = sshll.u32 %s197_s15, 6 }
  0x5a   : > { %s1265_s25 = scalar_lea.hbm %s1448_s2, %s593_s7 }
  0x5b   : > { %s871_s19 = scalar_lea.hbm %s1265_s25, 64  ;;  %p877_p4 = scmp.lt.u32.totalorder %s1265_s25, %s1448_s2 }
  0x5c   : > { %p872_p11 = scmp.ne.s32.totalorder %s1265_s25, %s871_s19  ;;  %p878_p12 = scmp.lt.u32.totalorder %s876_s18, %s871_s19 }
  0x5d   : > { %p880_p6 = scmp.lt.u32.totalorder %s871_s19, %s1265_s25 }
  0x5e   : > { %p874_p1 = pnand %p873_p13, %p872_p11  ;;  %p879_p5 = por %p878_p12, %p877_p4 }
  0x60   : > { %p875_p2 = pneg %p874_p1  ;;  %p881_p8 = por %p880_p6, %p879_p5 }
  0x62   : > { %p882_p0 = pnand %p881_p8, %p875_p2 }
  0x64   : > { %885 = shalt.err (!%p882_p0)
}
  0x65   : > { %s886_s26 = scalar_lea.vmem %s1260_s17, 64  ;;  %s1045_s5 = smov [#allocation6]  }
  0x66   : > { %p887_p11 = scmp.ne.s32.totalorder %s1260_s17, %s886_s26  ;;  %s891_s15 = sshll.u32 %s1045_s5, 4  ;;  %s892_s15 = int_to_ptr.vmem [resolvable:$false] %s891_s15 }
  0x67   : > { %s893_s24 = scalar_lea.vmem %s892_s15, 128  ;;  %p894_p3 = scmp.lt.s32.totalorder %s1260_s17, %s892_s15 }
  0x68   : > { %p889_p1 = pnand %p887_p11, %p873_p13  ;;  %p895_p4 = scmp.lt.s32.totalorder %s893_s24, %s886_s26 }
  0x6a   : > { %p890_p9 = pneg %p889_p1  ;;  %p896_p12 = por %p895_p4, %p894_p3 }
  0x6c   : > { %p897_p5 = pnand %p896_p12, %p890_p9 }
  0x6e   : > { %900 = shalt.err (!%p897_p5)
}
  0x6f   : > { %731 = dma.hbm_to_vmem [thread:$0]  (!%p1247_p10), %s1265_s25, 64, %s1260_s17, %s176_s30  }
  0x70   : > { %220 = sbr.rel (%p1254_p7) target bundleno = 439 (0x1b7), region = 28  ;;  %s222_s22 = sand.u32 (!%p1254_p7), 1, %s1009_s6  }
  0x71   : > { %s1295_s19 = sshll.u32 (!%p1254_p7), %s222_s22, 2  ;;  %s223_s12 = scalar_lea.sflag (!%p1254_p7), [#allocation7], %s222_s22 }
  0x72   : > { %s226_s16 = scalar_lea.vmem (!%p1254_p7), [#allocation6], %s1295_s19  ;;  %p1475_p0 = scmp.ne.s32.totalorder (!%p1254_p7), %s1466_s27, 0 }
  0x77   : > { %984 = dma.done.wait (%p1475_p0), %s223_s12, 64  }
  0x78   : > { %986 = vsyncadd (%p1475_p0), %s223_s12, 4294967232  ;;  %s251_s30 = sand.u32 1, %s997_s1   ;;  %p267_p3 = scmp.lt.s32.totalorder %s1025_s10, 1 }
  0x79   : > { %s1306_s17 = sshll.u32 %s251_s30, 2  ;;  %p269_p9 = scmp.lt.s32.totalorder %s1021_s9, 1 }
  0x7a   : > { %s268_s25 = scalar_select %p267_p3, %s1025_s10, 1 }
  0x7b   : > { %s270_s23 = scalar_select %p269_p9, %s1021_s9, 1 }
  0x7c   : > { %s597_s29 = sshll.u32 %s268_s25, 1  ;;  %s253_s26 = scalar_lea.vmem [#allocation9], %s1306_s17 }
  0x7d   : > { %s272_s18 = sadd.s32 %s597_s29, %s270_s23  ;;  %p598_p10 = scmp.ne.s32.totalorder %s1017_s8, 0 }
  0x7e   : > { %s273_s7 = scalar_lea.vmem %s1449_s3, %s272_s18  ;;  %v1046_v0 = vmov (!%p598_p10), 0.0  }
  0x7f   : > { %277 = sbr.rel (%p598_p10) target bundleno = 134 (0x86), region = 36  ;;  %278 = vst [vmem:[#allocation2] sm:$0xf] (!%p598_p10), %v1046_v0 }
  0x86 PF: > { %s279_s5 = sshra.s32 %s1021_s9, 7  ;;  %s284_s15 = sand.u32 127, %s1021_s9 }
  0x87   : > { %s281_s24 = sadd.s32 %s1025_s10, %s279_s5 }
  0x88   : > { %s599_s22 = sshll.u32 %s281_s24, 7 }
  0x89   : > { %s285_s12 = sadd.s32 %s599_s22, %s284_s15 }
  0x8a   : > { %s286_s25 = sld [smem:[#allocation4 + %s285_s12]] }
  0x8b   : > { %s287_s23 = sld [smem:[#allocation5 + %s285_s12]] }
  0x90   : > { %p288_p7 = scmp.ge.s32.totalorder %s1017_s8, %s286_s25 }
  0x91   : > { %p289_p13 = scmp.le.s32.totalorder %s1017_s8, %s287_s23 }
  0x93   : > { %p290_p2 = pnand %p289_p13, %p288_p7 }
  0x94   : > { %v296_v1 = vlaneseq (!%p290_p2)  ;;  %s600_s29 = sshll.u32 (!%p290_p2), %s1017_s8, 7  ;;  %v1047_v2 = vmov (!%p290_p2), 0.0|0.0   ;;  %vm1048_vm0 = vmmov (!%p290_p2), 0   ;;  %v1049_v5 = vmov (!%p290_p2), 0.0   ;;  %v1325_v6 = vld [vmem:[%s273_s7] ss:$0 sm:$0xff] (!%p290_p2) }
  0x95   : > { %293 = sbr.rel (%p290_p2) target bundleno = 404 (0x194), region = 40  ;;  %692 = vmatprep.subr.bf16.mxu0 (!%p290_p2), %v1047_v2  ;;  %v1323_v3 = vstv (!%p290_p2), %s600_s29  ;;  %689 = vmatprep.mubr.msk.f32.mxu0 (!%p290_p2), %vm1048_vm0, %v1049_v5  ;;  %v1050_v20 = vmov (!%p290_p2), 1.0|1.0   ;;  %v294_v39 = vld [vmem:[%s226_s16] sm:$0xf] (!%p290_p2) }
  0x96   : > { %v297_v4 = vshrl.u32 (!%p290_p2), %v296_v1, 7  ;;  %v383_v40 = vld [vmem:[#allocation2] sm:$0xf] (!%p290_p2) }
  0x98   : > { %v298_v7 = vadd.s32 (!%p290_p2), 8, %v297_v4  ;;  %v315_v8 = vadd.s32 (!%p290_p2), %v1323_v3, %v297_v4  ;;  %v299_v9 = vadd.s32 (!%p290_p2), 16, %v297_v4  ;;  %v300_v10 = vadd.s32 (!%p290_p2), 24, %v297_v4 }
  0x99   : > { %v301_v11 = vadd.s32 (!%p290_p2), 32, %v297_v4  ;;  %v302_v12 = vadd.s32 (!%p290_p2), 40, %v297_v4  ;;  %v303_v17 = vadd.s32 (!%p290_p2), 48, %v297_v4  ;;  %v304_v18 = vadd.s32 (!%p290_p2), 56, %v297_v4 }
  0x9a   : > { %v316_v13 = vadd.s32 (!%p290_p2), %v1323_v3, %v298_v7  ;;  %vm335_vm1 = vcmp.eq.s32.totalorder (!%p290_p2), %v1325_v6, %v315_v8  ;;  %v317_v14 = vadd.s32 (!%p290_p2), %v1323_v3, %v299_v9  ;;  %v318_v15 = vadd.s32 (!%p290_p2), %v1323_v3, %v300_v10 }
  0x9b   : > { %v319_v16 = vadd.s32 (!%p290_p2), %v1323_v3, %v301_v11  ;;  %v320_v19 = vadd.s32 (!%p290_p2), %v1323_v3, %v302_v12  ;;  %v321_v21 = vadd.s32 (!%p290_p2), %v1323_v3, %v303_v17  ;;  %v322_v22 = vadd.s32 (!%p290_p2), %v1323_v3, %v304_v18 }
  0x9c   : > { %vm336_vm2 = vcmp.eq.s32.totalorder %v1325_v6, %v316_v13  ;;  %vm337_vm3 = vcmp.eq.s32.totalorder %v1325_v6, %v317_v14  ;;  %vm338_vm4 = vcmp.eq.s32.totalorder %v1325_v6, %v318_v15  ;;  %v305_v23 = vadd.s32 64, %v297_v4 }
  0x9d   : > { %vm693_vm5 = vmpackc.low %vm336_vm2, %vm335_vm1  ;;  %vm339_vm7 = vcmp.eq.s32.totalorder %v1325_v6, %v319_v16  ;;  %vm340_vm8 = vcmp.eq.s32.totalorder %v1325_v6, %v320_v19  ;;  %v306_v24 = vadd.s32 72, %v297_v4  ;;  %vm341_vm10 = vcmp.eq.s32.totalorder %v1325_v6, %v321_v21 }
  0x9e   : > { %694 = vmatpush3.bf16.msk.msra.mxu0 %vm693_vm5, %v1050_v20  ;;  %vm696_vm6 = vmpackc.low %vm338_vm4, %vm337_vm3  ;;  %vm342_vm11 = vcmp.eq.s32.totalorder %v1325_v6, %v322_v22  ;;  %v323_v25 = vadd.s32 %v1323_v3, %v305_v23  ;;  %v307_v27 = vadd.s32 80, %v297_v4  ;;  %v308_v28 = vadd.s32 88, %v297_v4 }
  0x9f   : > { %695 = vmatprep.subr.bf16.mxu0 %v1047_v2  ;;  %vm699_vm9 = vmpackc.low %vm340_vm8, %vm339_vm7  ;;  %v324_v26 = vadd.s32 %v1323_v3, %v306_v24  ;;  %v309_v29 = vadd.s32 96, %v297_v4  ;;  %v310_v30 = vadd.s32 104, %v297_v4  ;;  %v311_v33 = vadd.s32 112, %v297_v4 }
  0xa0   : > { %vm702_vm12 = vmpackc.low %vm342_vm11, %vm341_vm10  ;;  %vm343_vm13 = vcmp.eq.s32.totalorder %v1325_v6, %v323_v25  ;;  %v325_v31 = vadd.s32 %v1323_v3, %v307_v27  ;;  %v326_v32 = vadd.s32 %v1323_v3, %v308_v28  ;;  %v312_v34 = vadd.s32 120, %v297_v4 }
  0xa1   : > { %vm344_vm14 = vcmp.eq.s32.totalorder %v1325_v6, %v324_v26  ;;  %v327_v35 = vadd.s32 %v1323_v3, %v309_v29  ;;  %v328_v36 = vadd.s32 %v1323_v3, %v310_v30  ;;  %v329_v37 = vadd.s32 %v1323_v3, %v311_v33 }
  0xa2   : > { %697 = vmatpush3.bf16.msk.msra.mxu0 %vm696_vm6, %v1050_v20  ;;  %vm705_vm15 = vmpackc.low %vm344_vm14, %vm343_vm13  ;;  %vm345_vm0 = vcmp.eq.s32.totalorder %v1325_v6, %v325_v31  ;;  %vm346_vm1 = vcmp.eq.s32.totalorder %v1325_v6, %v326_v32  ;;  %v330_v38 = vadd.s32 %v1323_v3, %v312_v34 }
  0xa3   : > { %698 = vmatprep.subr.bf16.mxu0 %v1047_v2  ;;  %vm708_vm2 = vmpackc.low %vm346_vm1, %vm345_vm0  ;;  %vm347_vm3 = vcmp.eq.s32.totalorder %v1325_v6, %v327_v35  ;;  %vm348_vm4 = vcmp.eq.s32.totalorder %v1325_v6, %v328_v36  ;;  %vm349_vm6 = vcmp.eq.s32.totalorder %v1325_v6, %v329_v37 }
  0xa4   : > { %vm711_vm5 = vmpackc.low %vm348_vm4, %vm347_vm3  ;;  %vm350_vm7 = vcmp.eq.s32.totalorder %v1325_v6, %v330_v38 }
  0xa5   : > { %vm714_vm8 = vmpackc.low %vm350_vm7, %vm349_vm6 }
  0xa6   : > { %700 = vmatpush3.bf16.msk.msra.mxu0 %vm699_vm9, %v1050_v20 }
  0xa7   : > { %701 = vmatprep.subr.bf16.mxu0 %v1047_v2 }
  0xaa   : > { %703 = vmatpush3.bf16.msk.msra.mxu0 %vm702_vm12, %v1050_v20 }
  0xab   : > { %704 = vmatprep.subr.bf16.mxu0 %v1047_v2 }
  0xae   : > { %706 = vmatpush3.bf16.msk.msra.mxu0 %vm705_vm15, %v1050_v20 }
  0xaf   : > { %707 = vmatprep.subr.bf16.mxu0 %v1047_v2 }
  0xb2   : > { %709 = vmatpush3.bf16.msk.msra.mxu0 %vm708_vm2, %v1050_v20 }
  0xb3   : > { %710 = vmatprep.subr.bf16.mxu0 %v1047_v2 }
  0xb6   : > { %712 = vmatpush3.bf16.msk.msra.mxu0 %vm711_vm5, %v1050_v20 }
  0xb7   : > { %713 = vmatprep.subr.bf16.mxu0 %v1047_v2 }
  0xba   : > { %715 = vmatpush3.bf16.msk.msra.mxu0 %vm714_vm8, %v1050_v20 }
  0xbd   : > { %690 = vmatmul.mubr.f32.vlgmr.msra.gmra.mrb[0].mxu0 %v294_v39 }
 0x190   : > { %v450_v41 = vpop.f32.mrb[0].mxu0 }
 0x191   : > { %v454_v42 = vadd.f32 %v450_v41, %v383_v40  ;;  %v691_v43 = vpop.f32.mrb[1].mxu0 }
 0x193   : > { %455 = vst [vmem:[#allocation2] sm:$0xf] %v454_v42 }
 0x194 PF: > { %p634_p6 = scmp.ne.s32.totalorder %s1017_s8, 1 }
 0x196   : > { %459 = sbr.rel (%p634_p6) target bundleno = 413 (0x19d), region = 44 }
 0x19a   : > { %v460_v44 = vld [vmem:[#allocation2] sm:$0xf] (!%p634_p6) }
 0x19b   : > { %461 = vst [vmem:[%s253_s26] sm:$0xf] (!%p634_p6), %v460_v44 }
 0x19d PF: > { %s636_s19 = sshll.u32 %s1025_s10, 1  ;;  %s478_s18 = sshll.u32 %s253_s26, 4  ;;  %s1375_s18 = int_to_ptr.vmem [resolvable:$true] %s478_s18 }
 0x19e   : > { %s474_s16 = sadd.s32 %s1021_s9, %s636_s19  ;;  %s463_s5 = scalar_lea.sflag [#allocation8], %s251_s30 }
 0x19f   : > { %s637_s28 = sshll.u32 %s474_s16, 6  ;;  %s901_s15 = scalar_lea.vmem %s1375_s18, 64 }
 0x1a0   : > { %s476_s7 = scalar_lea.hbm %s1450_s4, %s637_s28  ;;  %p902_p8 = scmp.ne.s32.totalorder %s1375_s18, %s901_s15 }
 0x1a1   : > { %p1476_p11 = scmp.ne.s32.totalorder %s1468_s21, 0  ;;  %s1051_s9 = smov [#allocation9]  }
 0x1a2   : > { %s905_s10 = sshll.u32 %s1051_s9, 4  ;;  %s906_s10 = int_to_ptr.vmem [resolvable:$false] %s905_s10 }
 0x1a3   : > { %p903_p1 = pnand %p902_p8, %p1476_p11  ;;  %s907_s17 = scalar_lea.vmem %s906_s10, 128 }
 0x1a4   : > { %p908_p12 = scmp.lt.s32.totalorder %s1375_s18, %s906_s10  ;;  %p909_p5 = scmp.lt.s32.totalorder %s907_s17, %s901_s15 }
 0x1a5   : > { %p904_p4 = pneg %p903_p1 }
 0x1a6   : > { %p910_p0 = por %p909_p5, %p908_p12 }
 0x1a8   : > { %p911_p3 = pnand %p910_p0, %p904_p4 }
 0x1aa   : > { %914 = shalt.err (!%p911_p3)
}
 0x1ab   : > { %s915_s26 = scalar_lea.hbm %s476_s7, 64  ;;  %s919_s22 = scalar_lea.hbm %s1450_s4, 256 }
 0x1ac   : > { %p916_p9 = scmp.ne.s32.totalorder %s476_s7, %s915_s26  ;;  %p920_p13 = scmp.lt.u32.totalorder %s476_s7, %s1450_s4 }
 0x1ad   : > { %p921_p2 = scmp.lt.u32.totalorder %s919_s22, %s915_s26  ;;  %p923_p8 = scmp.lt.u32.totalorder %s915_s26, %s476_s7 }
 0x1ae   : > { %p917_p10 = pnand %p916_p9, %p1476_p11 }
 0x1af   : > { %p922_p6 = por %p921_p2, %p920_p13 }
 0x1b0   : > { %p918_p7 = pneg %p917_p10 }
 0x1b1   : > { %p924_p1 = por %p923_p8, %p922_p6 }
 0x1b3   : > { %p925_p4 = pnand %p924_p1, %p918_p7 }
 0x1b5   : > { %928 = shalt.err (!%p925_p4)
}
 0x1b6   : > { %722 = dma.vmem_to_hbm [thread:$0]  (%p1476_p11), %s1375_s18, 64, %s476_s7, %s463_s5  }
 0x1b7 PF: > { %p737_p12 = scmp.ge.s32.totalorder %s1041_s14, 2  ;;  %s490_s23 = sand.u32 1, %s993_s0  }
 0x1b8   : > { %p1477_p5 = scmp.ne.s32.totalorder %s1470_s20, 0  ;;  %s491_s29 = scalar_lea.sflag [#allocation8], %s490_s23 }
 0x1ba   : > { %p733_p0 = pnand %p737_p12, %p1477_p5 }
 0x1bc   : > { %988 = dma.done.wait (!%p733_p0), %s491_s29, 64  }
 0x1bd   : > { %990 = vsyncadd (!%p733_p0), %s491_s29, 4294967232  ;;  %s28_s14 = sadd.s32 1, %s1041_s14   ;;  %s1479_s21 = sld [smem:[#allocation17_spill]] }
 0x1be   : > { %p1403_p3 = scmp.ge.s32.totalorder %s28_s14, 10   ;;  %s1480_s30 = sld [smem:[#allocation23_spill]] }
 0x1bf   : > { %s1481_s16 = sld [smem:[#allocation18_spill]]  ;;  %s1482_s7 = sld [smem:[#allocation24_spill]] }
 0x1c0   : > { %s1483_s9 = sld [smem:[#allocation19_spill]]  ;;  %s1484_s20 = sld [smem:[#allocation20_spill]] }
 0x1c1   : > { %s1485_s12 = sld [smem:[#allocation21_spill]]  ;;  %s1486_s18 = sld [smem:[#allocation22_spill]] }
 0x1c2   : > { %s1487_s0 = smov %s997_s1  ;;  %s1489_s5 = smov %s1009_s6 }
 0x1c3   : > { %s1488_s1 = smov %s1479_s21  ;;  %s1491_s8 = smov %s1029_s11 }
 0x1c4   : > { %s1492_s10 = smov %s1037_s13  ;;  %27 = sbr.rel (!%p1403_p3) target bundleno = 32 (0x20), region = 88 }
 0x1c5   : > { %s1490_s6 = smov %s1481_s16 }
 0x1c6   : > { %s1493_s11 = smov %s1484_s20 }
 0x1c7   : > { %s1494_s13 = smov %s1486_s18 }
 0x1cb   :  { %496 = vsyncpa [#allocation7], 1 }
 0x1cc   :  { %498 = vsyncpa [#allocation7 + $0x1], 1 }
 0x1cd   :  { %499 = vsyncpa [#allocation8], 1 }
 0x1ce   :  { %501 = vsyncpa [#allocation8 + $0x1], 1 }

</bundles_post_ra>
